<compile_context>
chip_gen: v5e
topology: v5e:2x2
jax: 0.10.0
libtpu: 0.0.40
codegen_flags: <defaults>
</compile_context>

<pallas_src>
import functools

import jax
import jax.numpy as jnp
from jax.experimental import pallas as pl
from jax.experimental.pallas import tpu as pltpu

H1, H2, OUT = 32, 8, 1

_TILE_BUDGET_BYTES = 24 * 1024 * 1024   # target tile footprint (fits all gens' VMEM)
_VMEM_REQUEST_BYTES = 32 * 1024 * 1024  # explicit scoped-VMEM request (safe everywhere)
_MAX_LANE_TILE = 64 * 1024              # review: raise lane-tile cap to 16K-64K


def _cdiv(a, b):
    return -(-a // b)


def mlp_kernel(xT_ref, w1_ref, b1_ref, w2_ref, b2_ref, w3_ref, b3_ref, o_ref,
               *, low_precision_elementwise):
    # Layer 1: (32, in) @ (in, TB) -> (32, TB); MXU matmul with f32 accumulation.
    h1 = jnp.dot(w1_ref[...], xT_ref[...], preferred_element_type=jnp.float32)
    if low_precision_elementwise:
        # v6e/v7x bf16 path: bias + ReLU in bf16 (2x elems/vreg, no separate cast op).
        h1 = jnp.maximum(h1.astype(w2_ref.dtype) + b1_ref[...], 0)
    else:
        h1 = jnp.maximum(h1 + b1_ref[...], 0.0).astype(w2_ref.dtype)
    # Dropout(0.2): identity in inference mode.

    # Layer 2: (8, 32) @ (32, TB) -> (8, TB); MXU matmul with f32 accumulation.
    h2 = jnp.dot(w2_ref[...], h1, preferred_element_type=jnp.float32)
    h2 = jnp.maximum(h2 + b2_ref[...], 0.0)
    # Dropout(0.2): identity in inference mode.

    # Layer 3 (8 -> 1): VPU broadcast-multiply + sublane reduce (XLU), not an MXU dot.
    out = jnp.sum(h2 * w3_ref[...], axis=0, keepdims=True) + b3_ref[...]
    o_ref[...] = out.astype(o_ref.dtype)


def _per_col_bytes(input_size, x_bpe):
    # Per lane-column VMEM: 2x-buffered x column + 2x-buffered f32 out column
    # + h1 (32 f32) and h2 (8 f32) temporaries.
    return 2 * input_size * x_bpe + 2 * OUT * 4 + (H1 + H2) * 4


def _choose_batch_tile(batch, per_col, weight_bytes):
    """Largest 128-aligned lane tile that fits the VMEM budget, gives >= 2 grid steps
    whenever the padded batch allows it (feeds both v7x TensorCores), and splits the
    batch near-evenly to limit padding."""
    budget = max(_TILE_BUDGET_BYTES - 2 * weight_bytes, per_col)
    max_tb = min(budget // per_col, _MAX_LANE_TILE)
    max_tb = max((max_tb // 128) * 128, 128)          # 128-lane aligned; one-vreg-row floor
    b_pad128 = _cdiv(batch, 128) * 128
    if b_pad128 < 2 * 128:
        return batch                                  # tiny batch: one full-dim block
    steps = max(_cdiv(b_pad128, max_tb), 2)           # >= 2 steps for megacore on v7x
    tb = _cdiv(_cdiv(b_pad128, steps), 128) * 128     # near-even, 128-aligned split
    return max(min(tb, max_tb), 128)


@functools.partial(jax.jit, static_argnames=("compute_dtype",))
def mlp_forward(x, params, *, compute_dtype=jnp.bfloat16):
    """x: (B, input_size) f32; params in kernel layout (see init_params). Returns (B,1) f32."""
    w1, b1, w2, b2, w3t, b3 = params
    B, input_size = x.shape
    cd = jnp.dtype(compute_dtype)
    is_bf16 = cd == jnp.dtype(jnp.bfloat16)

    # v5e has no bf16 VALU: keep elementwise ops in f32 there.
    kind = jax.devices()[0].device_kind.lower()
    low_precision_elementwise = bool(is_bf16 and ("v5" not in kind))

    # Cast the streamed/matmul operands; bias1 follows the elementwise precision.
    w1c, w2c = w1.astype(cd), w2.astype(cd)
    b1c = b1.astype(cd) if low_precision_elementwise else b1
    weight_bytes = sum(int(a.size) * a.dtype.itemsize
                       for a in (w1c, b1c, w2c, b2, w3t, b3))

    per_col = _per_col_bytes(input_size, cd.itemsize)
    tb = _choose_batch_tile(B, per_col, weight_bytes)
    b_pad = _cdiv(B, tb) * tb

    # Batch-on-lanes layout: (input_size, B_pad). Under jit, transpose+cast+pad fuse.
    x_t = x.T.astype(cd)
    if b_pad != B:
        x_t = jnp.pad(x_t, ((0, 0), (0, b_pad - B)))

    footprint = tb * per_col + 2 * weight_bytes
    vmem_limit = int(min(max(_VMEM_REQUEST_BYTES, footprint + (2 << 20)), 60 << 20))

    cost = pl.CostEstimate(
        flops=2 * B * (input_size * H1 + H1 * H2 + H2 * OUT),
        transcendentals=0,
        bytes_accessed=B * input_size * cd.itemsize + B * OUT * 4 + weight_bytes,
    )

    kernel = functools.partial(mlp_kernel,
                               low_precision_elementwise=low_precision_elementwise)

    out_t = pl.pallas_call(
        kernel,
        out_shape=jax.ShapeDtypeStruct((OUT, b_pad), jnp.float32),
        grid=(b_pad // tb,),
        in_specs=[
            pl.BlockSpec((input_size, tb), lambda i: (0, i)),   # x tile, streamed
            pl.BlockSpec((H1, input_size), lambda i: (0, 0)),   # W1 (VMEM-resident)
            pl.BlockSpec((H1, 1), lambda i: (0, 0)),            # b1
            pl.BlockSpec((H2, H1), lambda i: (0, 0)),           # W2
            pl.BlockSpec((H2, 1), lambda i: (0, 0)),            # b2
            pl.BlockSpec((H2, OUT), lambda i: (0, 0)),          # W3^T stored (8,1)
            pl.BlockSpec((OUT, 1), lambda i: (0, 0)),           # b3
        ],
        out_specs=pl.BlockSpec((OUT, tb), lambda i: (0, i)),    # lane-dense output tile
        compiler_params=pltpu.CompilerParams(
            dimension_semantics=("parallel",),                  # megacore on v7x
            vmem_limit_bytes=vmem_limit,
        ),
        cost_estimate=cost,
    )(x_t, w1c, b1c, w2c, b2, w3t, b3)

    return out_t[:, :B].T  # (B, 1) f32


def init_params(key, input_size):
    """nn.Linear-style uniform(-1/sqrt(fan_in), 1/sqrt(fan_in)) init, in kernel layout:
       W1 (32,in), b1 (32,1), W2 (8,32), b2 (8,1), W3^T (8,1), b3 (1,1)."""
    shapes = [
        ((H1, input_size), (H1, 1), input_size),
        ((H2, H1), (H2, 1), H1),
        ((H2, OUT), (OUT, 1), H2),   # last layer weight stored transposed: (in=8, out=1)
    ]
    params = []
    for w_shape, b_shape, fan_in in shapes:
        key, kw, kb = jax.random.split(key, 3)
        bound = 1.0 / (fan_in ** 0.5)
        params.append(jax.random.uniform(kw, w_shape, jnp.float32, -bound, bound))
        params.append(jax.random.uniform(kb, b_shape, jnp.float32, -bound, bound))
    return params


def reference_forward(x, params):
    w1, b1, w2, b2, w3t, b3 = params
    h1 = jnp.maximum(x @ w1.T + b1.T, 0.0)
    h2 = jnp.maximum(h1 @ w2.T + b2.T, 0.0)
    return h2 @ w3t + b3.T


if __name__ == "__main__":
    key = jax.random.PRNGKey(0)
    key, kx = jax.random.split(key)

    batch, input_size = 8, 16
    x = jax.random.normal(kx, (batch, input_size), jnp.float32)
    params = init_params(key, input_size)

    ref = reference_forward(x, params)

    # f32 data path: must match the reference tightly.
    out_f32 = mlp_forward(x, params, compute_dtype=jnp.float32)
    jax.block_until_ready(out_f32)
    assert out_f32.shape == (batch, 1)
    assert jnp.allclose(out_f32, ref, atol=1e-5, rtol=1e-5)

    # Default bf16 HBM/matmul data path (f32 accumulation): looser tolerance.
    out_bf16 = mlp_forward(x, params)
    jax.block_until_ready(out_bf16)
    assert out_bf16.shape == (batch, 1)
    assert jnp.allclose(out_bf16, ref, atol=5e-2, rtol=5e-2)

    print("KERNEL_OK")
</pallas_src>

<mosaic_0001>
module attributes {stable_mosaic.version = 11 : i64} {
  func.func @mlp_kernel(%arg0: i32, %arg1: memref<16x8xf32, #tpu.memory_space<vmem>>, %arg2: memref<32x16xf32, #tpu.memory_space<vmem>>, %arg3: memref<32x1xf32, #tpu.memory_space<vmem>>, %arg4: memref<8x32xf32, #tpu.memory_space<vmem>>, %arg5: memref<8x1xf32, #tpu.memory_space<vmem>>, %arg6: memref<8x1xf32, #tpu.memory_space<vmem>>, %arg7: memref<1x1xf32, #tpu.memory_space<vmem>>, %arg8: memref<1x8xf32, #tpu.memory_space<vmem>>) attributes {dimension_semantics = [#tpu.dimension_semantics<parallel>], iteration_bounds = array<i64: 1>, scalar_prefetch = 0 : i64, scratch_operands = 0 : i64, tpu.core_type = #tpu.core_type<tc>, window_params = [{transform_indices = @transform_0, window_bounds = array<i64: 16, 8>}, {pipeline_mode = #tpu.pipeline_mode<synchronous>, transform_indices = @transform_1, window_bounds = array<i64: 32, 16>}, {pipeline_mode = #tpu.pipeline_mode<synchronous>, transform_indices = @transform_2, window_bounds = array<i64: 32, 1>}, {pipeline_mode = #tpu.pipeline_mode<synchronous>, transform_indices = @transform_3, window_bounds = array<i64: 8, 32>}, {pipeline_mode = #tpu.pipeline_mode<synchronous>, transform_indices = @transform_4, window_bounds = array<i64: 8, 1>}, {pipeline_mode = #tpu.pipeline_mode<synchronous>, transform_indices = @transform_5, window_bounds = array<i64: 8, 1>}, {pipeline_mode = #tpu.pipeline_mode<synchronous>, transform_indices = @transform_6, window_bounds = array<i64: 1, 1>}, {transform_indices = @transform_7, window_bounds = array<i64: 1, 8>}]} {
    %c0 = arith.constant 0 : index
    %c0_0 = arith.constant 0 : index
    %0 = vector.load %arg2[%c0, %c0_0] : memref<32x16xf32, #tpu.memory_space<vmem>>, vector<32x16xf32>
    %c0_1 = arith.constant 0 : index
    %c0_2 = arith.constant 0 : index
    %1 = vector.load %arg1[%c0_1, %c0_2] : memref<16x8xf32, #tpu.memory_space<vmem>>, vector<16x8xf32>
    %cst = arith.constant dense<0.000000e+00> : vector<32x8xf32>
    %2 = tpu.matmul %0, %1, %cst {dimension_numbers = #tpu.dot_dimension_numbers<[1], [0], [0], [1], [0, 0, 1, 1], [], []>} : vector<32x16xf32>, vector<16x8xf32>, vector<32x8xf32> -> vector<32x8xf32>
    %c0_3 = arith.constant 0 : index
    %c0_4 = arith.constant 0 : index
    %3 = vector.load %arg3[%c0_3, %c0_4] : memref<32x1xf32, #tpu.memory_space<vmem>>, vector<32x1xf32>
    %4 = vector.broadcast %3 : vector<32x1xf32> to vector<32x8xf32>
    %5 = arith.addf %2, %4 : vector<32x8xf32>
    %cst_5 = arith.constant 0.000000e+00 : f32
    %6 = vector.broadcast %cst_5 : f32 to vector<32x8xf32>
    %7 = arith.maximumf %5, %6 : vector<32x8xf32>
    %c0_6 = arith.constant 0 : index
    %c0_7 = arith.constant 0 : index
    %8 = vector.load %arg4[%c0_6, %c0_7] : memref<8x32xf32, #tpu.memory_space<vmem>>, vector<8x32xf32>
    %cst_8 = arith.constant dense<0.000000e+00> : vector<8x8xf32>
    %9 = tpu.matmul %8, %7, %cst_8 {dimension_numbers = #tpu.dot_dimension_numbers<[1], [0], [0], [1], [0, 0, 1, 1], [], []>} : vector<8x32xf32>, vector<32x8xf32>, vector<8x8xf32> -> vector<8x8xf32>
    %c0_9 = arith.constant 0 : index
    %c0_10 = arith.constant 0 : index
    %10 = vector.load %arg5[%c0_9, %c0_10] : memref<8x1xf32, #tpu.memory_space<vmem>>, vector<8x1xf32>
    %11 = vector.broadcast %10 : vector<8x1xf32> to vector<8x8xf32>
    %12 = arith.addf %9, %11 : vector<8x8xf32>
    %cst_11 = arith.constant 0.000000e+00 : f32
    %13 = vector.broadcast %cst_11 : f32 to vector<8x8xf32>
    %14 = arith.maximumf %12, %13 : vector<8x8xf32>
    %c0_12 = arith.constant 0 : index
    %c0_13 = arith.constant 0 : index
    %15 = vector.load %arg6[%c0_12, %c0_13] : memref<8x1xf32, #tpu.memory_space<vmem>>, vector<8x1xf32>
    %16 = vector.broadcast %15 : vector<8x1xf32> to vector<8x8xf32>
    %17 = arith.mulf %14, %16 : vector<8x8xf32>
    %cst_14 = arith.constant dense<0.000000e+00> : vector<8xf32>
    %18 = vector.multi_reduction <add>, %17, %cst_14 [0] : vector<8x8xf32> to vector<8xf32>
    %19 = vector.shape_cast %18 : vector<8xf32> to vector<1x8xf32>
    %c0_15 = arith.constant 0 : index
    %c0_16 = arith.constant 0 : index
    %20 = vector.load %arg7[%c0_15, %c0_16] : memref<1x1xf32, #tpu.memory_space<vmem>>, vector<1x1xf32>
    %21 = vector.broadcast %20 : vector<1x1xf32> to vector<1x8xf32>
    %22 = arith.addf %19, %21 : vector<1x8xf32>
    %c0_17 = arith.constant 0 : index
    %c0_18 = arith.constant 0 : index
    %23 = vector.load %arg8[%c0_17, %c0_18] : memref<1x8xf32, #tpu.memory_space<vmem>>, vector<1x8xf32>
    tpu.vector_store %arg8[%c0_17, %c0_18], %22 {strides = array<i32>} : memref<1x8xf32, #tpu.memory_space<vmem>>, vector<1x8xf32>,
    return
  }
  func.func @transform_0(%arg0: i32) -> (i32, i32) {
    %c0_i32 = arith.constant 0 : i32
    %c0_i32_0 = arith.constant 0 : i32
    return %c0_i32, %arg0 : i32, i32
  }
  func.func @transform_1(%arg0: i32) -> (i32, i32) {
    %c0_i32 = arith.constant 0 : i32
    %c0_i32_0 = arith.constant 0 : i32
    %c0_i32_1 = arith.constant 0 : i32
    return %c0_i32, %c0_i32_0 : i32, i32
  }
  func.func @transform_2(%arg0: i32) -> (i32, i32) {
    %c0_i32 = arith.constant 0 : i32
    %c0_i32_0 = arith.constant 0 : i32
    %c0_i32_1 = arith.constant 0 : i32
    return %c0_i32, %c0_i32_0 : i32, i32
  }
  func.func @transform_3(%arg0: i32) -> (i32, i32) {
    %c0_i32 = arith.constant 0 : i32
    %c0_i32_0 = arith.constant 0 : i32
    %c0_i32_1 = arith.constant 0 : i32
    return %c0_i32, %c0_i32_0 : i32, i32
  }
  func.func @transform_4(%arg0: i32) -> (i32, i32) {
    %c0_i32 = arith.constant 0 : i32
    %c0_i32_0 = arith.constant 0 : i32
    %c0_i32_1 = arith.constant 0 : i32
    return %c0_i32, %c0_i32_0 : i32, i32
  }
  func.func @transform_5(%arg0: i32) -> (i32, i32) {
    %c0_i32 = arith.constant 0 : i32
    %c0_i32_0 = arith.constant 0 : i32
    %c0_i32_1 = arith.constant 0 : i32
    return %c0_i32, %c0_i32_0 : i32, i32
  }
  func.func @transform_6(%arg0: i32) -> (i32, i32) {
    %c0_i32 = arith.constant 0 : i32
    %c0_i32_0 = arith.constant 0 : i32
    %c0_i32_1 = arith.constant 0 : i32
    return %c0_i32, %c0_i32_0 : i32, i32
  }
  func.func @transform_7(%arg0: i32) -> (i32, i32) {
    %c0_i32 = arith.constant 0 : i32
    %c0_i32_0 = arith.constant 0 : i32
    return %c0_i32, %arg0 : i32, i32
  }
}

</mosaic_0001>

<bundles_post_ra>
// kernel: mlp_forward.1
= control target key start
LH: loop header
LB: loop body
LE: loop exit
PB: predicated region body
PF: predicated region fallthrough
CT: control target
= control target key end

     0   :  { %s309_s0 = inlined_call_operand.vmem [shape: f32[16,8], index: 0, kind: input, shape index: {}]   ;;  %s310_s1 = inlined_call_operand.vmem [shape: f32[32,16], index: 1, kind: input, shape index: {}]   ;;  %s311_s2 = inlined_call_operand.vmem [shape: f32[32,1], index: 2, kind: input, shape index: {}]   ;;  %s312_s3 = inlined_call_operand.vmem [shape: f32[8,32], index: 3, kind: input, shape index: {}]   ;;  %s313_s4 = inlined_call_operand.vmem [shape: f32[8,1], index: 4, kind: input, shape index: {}]   ;;  %s314_s5 = inlined_call_operand.vmem [shape: f32[8,1], index: 5, kind: input, shape index: {}]   ;;  %s315_s6 = inlined_call_operand.<no memory space> [shape: f32[1,1], index: 6, kind: input, shape index: {}]   ;;  %s316_s7 = inlined_call_operand.hbm [shape: f32[1,8], index: 7, kind: output, shape index: {}]  }
   0x1   :  { %v12_v0 = vstv %s315_s6 }
   0x2   :  { %13 = vst [vmem:[#allocation2] sm:$0x1] %v12_v0 }
   0x3   :  { %v34_v1 = vld [vmem:[%s309_s0 + $0x8] sm:$0xff]  ;;  %v33_v2 = vld [vmem:[%s309_s0] sm:$0xff]  ;;  %vm59_vm0 = vcmask 130048   ;;  %v32_v4 = vld [vmem:[%s310_s1 + $0x18] sm:$0xff]  ;;  %v218_v5 = vmov 0  }
   0x4   :  { %183 = vmatpush.msra.mxu2 %v34_v1  ;;  %184 = vmatpush.msra.mxu3 %v34_v1  ;;  %v30_v3 = vld [vmem:[%s310_s1 + $0x8] sm:$0xff]  ;;  %v38_v6 = vld [vmem:[%s311_s2 + $0x18] sm:$0xff]  ;;  %v29_v7 = vld [vmem:[%s310_s1] sm:$0xff] }
   0x5   :  { %189 = vset.pattern.permute.xlu0 %v218_v5  ;;  %86 = vmatpush.msra.mxu0 %v34_v1 }
   0x6   :  { %185 = vmatpush.msra.mxu2 %v33_v2  ;;  %186 = vmatpush.msra.mxu3 %v33_v2 }
   0x7   :  { %14 = vsyncpa [#allocation4], 0  ;;  %179 = vmatmul.msk.f32.vlgmr.msra.gmra.mxu2 %vm59_vm0, %v30_v3  ;;  %181 = vmatmul.msk.f32.vlgmr.msra.gmra.mxu3 %vm59_vm0, %v32_v4  ;;  %v36_v8 = vld [vmem:[%s311_s2 + $0x8] sm:$0xff]  ;;  %v31_v9 = vld [vmem:[%s310_s1 + $0x10] sm:$0xff]  ;;  %vm112_vm1 = vcmask 261120   ;;  %vm144_vm2 = vcmask 64512  }
   0x8   :  { %56 = vperm.xlu0 %189, %v38_v6   ;;  %87 = vmatpush.msra.mxu0 %v33_v2  ;;  %v37_v10 = vld [vmem:[%s311_s2 + $0x10] sm:$0xff]  ;;  %v35_v11 = vld [vmem:[%s311_s2] sm:$0xff]  ;;  %s169_s26 = sshll.u32 %s316_s7, 4  ;;  %vm160_vm3 = vcmask 57344   ;;  %s170_s26 = int_to_ptr.hbm [resolvable:$true] %s169_s26 }
   0x9   :  { %178 = vmatmul.msk.f32.vlgmr.msra.gmra.mxu0 %vm59_vm0, %v29_v7  ;;  %190 = vset.pattern.permute.xlu1 %v218_v5  ;;  %v152_v12 = vld [vmem:[#allocation2] sm:$0x1] }
   0xa   :  { %46 = vperm.xlu1 %190, %v36_v8   ;;  %191 = vset.pattern.permute.xlu2 %v218_v5  ;;  %v106_v13 = vld [vmem:[%s313_s4] sm:$0xff] }
   0xb   :  { %109 = vperm.xlu2 %191, %v106_v13   ;;  %v137_v14 = vld [vmem:[%s314_s5] sm:$0xff]  ;;  %s219_s5 = smov [#allocation3]  }
   0xc   :  { %v105_v31 = vld [vmem:[%s312_s3] sm:$0xff]  ;;  %s167_s24 = sshll.u32 %s219_s5, 4  ;;  %s168_s24 = int_to_ptr.vmem [resolvable:$true] %s167_s24 }
   0xf   :  { %180 = vmatmul.msk.f32.gmra.mxu2 %vm59_vm0, %v31_v9 }
  0x10   :  { %51 = vperm.xlu0 %189, %v37_v10  }
  0x12   :  { %41 = vperm.xlu1 %190, %v35_v11  }
  0x13   :  { %140 = vperm.xlu2 %191, %v137_v14  }
  0x18   :  { %155 = vperm.xlu0 %189, %v152_v12  }
  0x65   :  { %v110_v32 = vpop.permute.xlu2 %109 }
  0x6d   :  { %v141_v36 = vpop.permute.xlu2 %140 }
  0x7a   :  { %v57_v15 = vpop.permute.xlu0 %56 }
  0x7c   :  { %v47_v16 = vpop.permute.xlu1 %46 }
  0x82   :  { %v52_v21 = vpop.permute.xlu0 %51 }
  0x84   :  { %v42_v22 = vpop.permute.xlu1 %41 }
  0x86   :  { %v89_v23 = vpop.f32.mrf.mxu0 }
  0x87   :  { %v90_v27 = vadd.f32 %v89_v23, %v42_v22 }
  0x89   :  { %v101_v30 = vmax.f32 %v90_v27, 0.0 }
  0x8a   :  { %v92_v17 = vpop.f32.mrf.mxu2  ;;  %v98_v18 = vpop.f32.mrf.mxu3 }
  0x8b   :  { %v99_v19 = vadd.f32 %v98_v18, %v57_v15  ;;  %v93_v25 = vadd.f32 %v92_v17, %v47_v16  ;;  %v156_v43 = vpop.permute.xlu0 %155 }
  0x8c   :  { %v158_v45 = vperm.slane %v156_v43, 0 }
  0x8d   :  { %v104_v20 = vmax.f32 %v99_v19, 0.0  ;;  %v102_v29 = vmax.f32 %v93_v25, 0.0 }
  0x8f   :  { %128 = vmatpush.msra.mxu1 %v104_v20 }
  0x92   :  { %v95_v24 = vpop.f32.mrf.mxu2 }
  0x93   :  { %v96_v26 = vadd.f32 %v95_v24, %v52_v21 }
  0x95   :  { %v103_v28 = vmax.f32 %v96_v26, 0.0 }
  0x97   :  { %129 = vmatpush.msra.mxu1 %v103_v28 }
  0x99   :  { %130 = vmatpush.msra.mxu1 %v102_v29 }
  0x9b   :  { %131 = vmatpush.msra.mxu1 %v101_v30 }
  0x9c   :  { %182 = vmatmul.msk.f32.vlgmr.msra.gmra.mxu1 %vm112_vm1, %v105_v31 }
 0x119   :  { %v133_v33 = vpop.f32.mrf.mxu1 }
 0x11a   :  { %v134_v34 = vadd.f32 %v133_v33, %v110_v32 }
 0x11c   :  { %v136_v35 = vmax.f32 %v134_v34, 0.0 }
 0x11e   :  { %v143_v37 = vmul.f32 %v141_v36, %v136_v35 }
 0x120   :  { %v145_v38 = vsel %vm144_vm2, %v143_v37, 0.0 }
 0x121   :  { %v146_v39 = vrot.slane %v145_v38, 4 }
 0x123   :  { %v147_v40 = vadd.f32 %v146_v39, %v145_v38 }
 0x125   :  { %v148_v41 = vrot.slane %v147_v40, 2 }
 0x127   :  { %v149_v42 = vadd.f32 %v148_v41, %v147_v40 }
 0x129   :  { %v150_v44 = vrot.slane %v149_v42, 1 }
 0x12b   :  { %v151_v46 = vadd.f32 %v150_v44, %v149_v42 }
 0x12d   :  { %v159_v47 = vadd.f32 %v158_v45, %v151_v46 }
 0x12f   :  { %161 = vst.msk [vmem:[#allocation3] sm:$0x1] %vm160_vm3, %v159_v47 }
 0x130   :  { %172 = dma.vmem_to_hbm [thread:$0]  %s168_s24, 16, %s170_s26, [#allocation4]  }
 0x131   :  { %216 = dma.done.wait [#allocation4], 16  }
 0x132   :  { %217 = vsyncadd [#allocation4], 4294967280 }
 0x133   :  { %177 = vsyncpa [#allocation4], 1 }

</bundles_post_ra>
